<compile_context>
chip_gen: v7x
topology: tpu7x:2x2x1
jax: 0.10.0
libtpu: 0.0.40
codegen_flags: <defaults>
</compile_context>

<pallas_src>
import jax
import jax.numpy as jnp
from jax.experimental import pallas as pl
from jax.experimental.pallas import tpu as pltpu


def _vmem_budgets():
    """(double-buffered working-set budget, vmem_limit_bytes) from physical VMEM."""
    cap = 64 << 20                                  # conservative fallback (v7x per-TC)
    try:
        info = pltpu.get_tpu_info()
        cap = int(getattr(info, "vmem_capacity_bytes", cap))
    except Exception:
        pass
    budget = min(int(cap * 0.30), 32 << 20)         # v5e/v6e: 32 MiB, v7x: ~19 MiB
    vmem_limit = min(int(cap * 0.70), 100 << 20)    # v5e/v6e: ~90 MiB, v7x: ~45 MiB
    return budget, vmem_limit


def _pick_blocks(R, HW, height, itemsize, budget_bytes):
    """Pick (row_block, tile_hw): lane-dense tiles sized to the VMEM budget."""
    hw128 = -(-HW // 128) * 128
    # Worst per-lane-per-row bytes across the two passes:
    #   pass 1: height inputs x 2 buffers x itemsize + f32 scratch (single buffer)
    #   pass 2: (height inputs + 1 output) x 2 buffers x itemsize
    per_lane_row = max(2 * height * itemsize + 4, 2 * (height + 1) * itemsize)

    def max_lanes(rows):
        rows_pad = -(-rows // 8) * 8
        lanes = budget_bytes // (per_lane_row * rows_pad)
        return (lanes // 128) * 128

    # Candidate row blocks, largest first: all rows at once, then mult-of-8 divisors.
    cands = [R]
    if R % 8 == 0:
        for rb in range(R - 8, 7, -8):
            if R % rb == 0:
                cands.append(rb)

    target = min(1024, hw128)                       # lane-dense knee (or full HW)
    row_block, tile_cap = cands[-1], 0
    for rb in cands:
        lanes = min(max_lanes(rb), hw128)
        if lanes >= target:
            row_block, tile_cap = rb, lanes
            break
    if tile_cap == 0:                               # budget too tight: best effort
        for rb in cands:
            lanes = min(max_lanes(rb), hw128)
            if lanes > tile_cap:
                row_block, tile_cap = rb, lanes
    tile_cap = max(tile_cap, 128)

    if hw128 <= tile_cap:                           # whole HW in one lane-dense tile
        return row_block, hw128
    # Prefer an exact multiple-of-128 divisor of hw128 (no wrapper padding).
    floor = max(512, tile_cap // 4)
    tile = tile_cap
    while tile >= floor:
        if hw128 % tile == 0:
            return row_block, tile
        tile -= 128
    # Rare (e.g. HW = 128*prime): keep the big tile; wrapper pads HW up to it.
    return row_block, tile_cap


def _make_pool_kernel(height):
    """Pass 1: element-wise accumulate sum_h(x_h) into a (rows, tile) scratch;
    lane-reduce once at the end of each (row block, split) segment."""
    def kernel(*refs):
        x_refs = refs[:height]                      # each (row_block, tile)
        o_ref = refs[height]                        # (1, row_block, 1) f32
        acc_ref = refs[height + 1]                  # (row_block, tile) f32 scratch
        t = pl.program_id(2)

        s = x_refs[0][...].astype(jnp.float32)
        for h in range(1, height):
            s = s + x_refs[h][...].astype(jnp.float32)

        @pl.when(t == 0)
        def _init():
            acc_ref[...] = s

        @pl.when(t != 0)
        def _accum():
            acc_ref[...] = acc_ref[...] + s

        @pl.when(t == pl.num_programs(2) - 1)
        def _finalize():
            o_ref[0] = jnp.sum(acc_ref[...], axis=-1, keepdims=True)

    return kernel


def _make_apply_kernel(height):
    """Pass 2: out = sum_h x_h * attn[h] (streaming, sublane-broadcast weights)."""
    def kernel(attn_ref, *refs):
        x_refs = refs[:height]                      # each (row_block, tile)
        o_ref = refs[height]                        # (row_block, tile)
        acc = x_refs[0][...].astype(jnp.float32) * attn_ref[0]
        for h in range(1, height):
            acc = acc + x_refs[h][...].astype(jnp.float32) * attn_ref[h]
        o_ref[...] = acc.astype(o_ref.dtype)

    return kernel


def sk_fusion(in_feats, w1, w2, *, tile_hw=None, row_block=None):
    """SKFusion forward.
    in_feats: list of `height` arrays (B, C, H, W)
    w1: (C, d)        == torch conv1 weight (d, C, 1, 1).squeeze().T
    w2: (d, height*C) == torch conv2 weight (height*C, d, 1, 1).squeeze().T
    Returns (B, C, H, W)."""
    height = len(in_feats)
    B, C, H, W = in_feats[0].shape
    HW = H * W
    R = B * C
    dtype = in_feats[0].dtype
    itemsize = jnp.dtype(dtype).itemsize

    budget, vmem_limit = _vmem_budgets()
    rb_auto, tile_auto = _pick_blocks(R, HW, height, itemsize, budget)
    if row_block is None:
        row_block = rb_auto
    if tile_hw is None:
        tile_hw = tile_auto
    assert tile_hw % 128 == 0 or tile_hw == HW, "tile_hw must be lane-aligned"
    assert row_block == R or (R % row_block == 0 and row_block % 8 == 0), \
        "row_block must be a multiple-of-8 divisor of B*C (or all rows)"

    hw_pad = -(-HW // tile_hw) * tile_hw
    nt = hw_pad // tile_hw
    n_rb = R // row_block

    # Free reshape to the row-flattened layout (no stack / transpose HBM traffic).
    xs = [x.reshape(R, HW) for x in in_feats]
    if hw_pad != HW:                                # rare fallback: zero-pad HW once
        xs = [jnp.pad(x, ((0, 0), (0, hw_pad - HW))) for x in xs]

    x_spec2 = pl.BlockSpec((row_block, tile_hw), lambda r, t: (r, t))
    bytes_in = height * R * hw_pad * itemsize

    # ---- pass 1: per-row sums of feats_sum; HW split in two for v7x megacore ----
    n_splits = 2 if (nt >= 2 and nt % 2 == 0) else 1
    nt_inner = nt // n_splits
    x_spec1 = pl.BlockSpec((row_block, tile_hw),
                           lambda r, s, t: (r, s * nt_inner + t))
    partials = pl.pallas_call(
        _make_pool_kernel(height),
        out_shape=jax.ShapeDtypeStruct((n_splits, R, 1), jnp.float32),
        grid=(n_rb, n_splits, nt_inner),
        in_specs=[x_spec1] * height,
        out_specs=pl.BlockSpec((1, row_block, 1), lambda r, s, t: (s, r, 0)),
        scratch_shapes=[pltpu.VMEM((row_block, tile_hw), jnp.float32)],
        compiler_params=pltpu.CompilerParams(
            dimension_semantics=("parallel", "parallel", "arbitrary"),
            vmem_limit_bytes=vmem_limit),
        cost_estimate=pl.CostEstimate(
            flops=(height + 1) * R * hw_pad, transcendentals=0,
            bytes_accessed=bytes_in + n_splits * R * 4),
    )(*xs)

    pooled = jnp.sum(partials[:, :, 0], axis=0) * (1.0 / HW)    # true means (R,)
    pooled = pooled.reshape(B, C)

    # ---- tiny MLP + softmax (batched, plain JAX; far too small for the MXU) ----
    h1 = pooled @ w1.astype(jnp.float32)                        # (B, d)
    h1 = jnp.where(h1 >= 0, h1, 0.01 * h1)                      # LeakyReLU(0.01)
    attn = h1 @ w2.astype(jnp.float32)                          # (B, height*C), ch = h*C + c
    attn = jax.nn.softmax(attn.reshape(B, height, C), axis=1)
    attn_rows = jnp.transpose(attn, (1, 0, 2)).reshape(height, R, 1)  # row layout

    # ---- pass 2: streaming weighted sum over height, tiled over (rows, HW) ----
    out = pl.pallas_call(
        _make_apply_kernel(height),
        out_shape=jax.ShapeDtypeStruct((R, hw_pad), dtype),
        grid=(n_rb, nt),
        in_specs=[pl.BlockSpec((height, row_block, 1), lambda r, t: (0, r, 0))]
                 + [x_spec2] * height,
        out_specs=x_spec2,
        compiler_params=pltpu.CompilerParams(
            dimension_semantics=("parallel", "parallel"),
            vmem_limit_bytes=vmem_limit),
        cost_estimate=pl.CostEstimate(
            flops=2 * height * R * hw_pad, transcendentals=0,
            bytes_accessed=bytes_in + R * hw_pad * itemsize + height * R * 4),
    )(attn_rows, *xs)

    if hw_pad != HW:
        out = out[:, :HW]
    return out.reshape(B, C, H, W)


def sk_fusion_reference(in_feats, w1, w2):
    """Pure-JAX reference mirroring the PyTorch forward."""
    height = len(in_feats)
    B, C, H, W = in_feats[0].shape
    x = jnp.stack(in_feats, axis=1)                 # (B, height, C, H, W)
    feats_sum = jnp.sum(x, axis=1)                  # (B, C, H, W)
    pooled = jnp.mean(feats_sum, axis=(2, 3))       # (B, C)
    h1 = pooled @ w1
    h1 = jnp.where(h1 >= 0, h1, 0.01 * h1)
    attn = (h1 @ w2).reshape(B, height, C)
    attn = jax.nn.softmax(attn, axis=1)
    return jnp.sum(x * attn[:, :, :, None, None], axis=1)


if __name__ == "__main__":
    key = jax.random.PRNGKey(0)

    def run_case(B, C, H, W, height, reduction=8, **kw):
        d = max(int(C / reduction), 4)
        ks = jax.random.split(jax.random.fold_in(key, B * 1000 + H * 10 + height),
                              height + 2)
        feats = [jax.random.normal(ks[i], (B, C, H, W), jnp.float32)
                 for i in range(height)]
        w1 = jax.random.normal(ks[height], (C, d), jnp.float32) / jnp.sqrt(C)
        w2 = jax.random.normal(ks[height + 1], (d, C * height), jnp.float32) / jnp.sqrt(d)
        out = jax.block_until_ready(sk_fusion(feats, w1, w2, **kw))
        ref = sk_fusion_reference(feats, w1, w2)
        assert out.shape == (B, C, H, W)
        assert jnp.allclose(out, ref, rtol=1e-4, atol=1e-4), \
            f"mismatch vs reference (B={B} C={C} H={H} W={W} height={height})"

    # SKFusion(dim=4, height=2, reduction=8): spec-sized case, auto tiling
    # (single lane-dense tile, whole HW in one block).
    run_case(2, 4, 16, 16, 2)
    # Forced small tiles: exercises the split HW reduction and multi-tile streaming.
    run_case(2, 4, 16, 16, 2, tile_hw=128)
    # height=3 with nt_inner>1: exercises the scratch accumulation path.
    run_case(2, 4, 16, 32, 3, tile_hw=128)

    print("KERNEL_OK")
</pallas_src>

<mosaic_0001>
module attributes {stable_mosaic.version = 11 : i64} {
  func.func @kernel(%arg0: i32, %arg1: i32, %arg2: i32, %arg3: memref<8x256xf32, #tpu.memory_space<vmem>>, %arg4: memref<8x256xf32, #tpu.memory_space<vmem>>, %arg5: memref<1x8x1xf32, #tpu.memory_space<vmem>>, %arg6: memref<8x256xf32, #tpu.memory_space<vmem>>) attributes {dimension_semantics = [#tpu.dimension_semantics<parallel>, #tpu.dimension_semantics<parallel>, #tpu.dimension_semantics<arbitrary>], iteration_bounds = array<i64: 1, 1, 1>, scalar_prefetch = 0 : i64, scratch_operands = 1 : i64, tpu.core_type = #tpu.core_type<tc>, window_params = [{transform_indices = @transform_0, window_bounds = array<i64: 8, 256>}, {transform_indices = @transform_1, window_bounds = array<i64: 8, 256>}, {transform_indices = @transform_2, window_bounds = array<i64: 1, 8, 1>}]} {
    %c0 = arith.constant 0 : index
    %c0_0 = arith.constant 0 : index
    %0 = vector.load %arg3[%c0, %c0_0] : memref<8x256xf32, #tpu.memory_space<vmem>>, vector<8x256xf32>
    %c0_1 = arith.constant 0 : index
    %c0_2 = arith.constant 0 : index
    %1 = vector.load %arg4[%c0_1, %c0_2] : memref<8x256xf32, #tpu.memory_space<vmem>>, vector<8x256xf32>
    %2 = arith.addf %0, %1 : vector<8x256xf32>
    %c0_i32 = arith.constant 0 : i32
    %3 = arith.cmpi eq, %arg2, %c0_i32 : i32
    %4 = arith.extui %3 : i1 to i32
    %c0_i32_3 = arith.constant 0 : i32
    %5 = arith.cmpi ne, %4, %c0_i32_3 : i32
    scf.if %5 {
      %c0_8 = arith.constant 0 : index
      %c0_9 = arith.constant 0 : index
      %12 = vector.load %arg6[%c0_8, %c0_9] : memref<8x256xf32, #tpu.memory_space<vmem>>, vector<8x256xf32>
      tpu.vector_store %arg6[%c0_8, %c0_9], %2 {strides = array<i32>} : memref<8x256xf32, #tpu.memory_space<vmem>>, vector<8x256xf32>,
    } else {
    }
    %c0_i32_4 = arith.constant 0 : i32
    %6 = arith.cmpi ne, %arg2, %c0_i32_4 : i32
    %7 = arith.extui %6 : i1 to i32
    %c0_i32_5 = arith.constant 0 : i32
    %8 = arith.cmpi ne, %7, %c0_i32_5 : i32
    scf.if %8 {
      %c0_8 = arith.constant 0 : index
      %c0_9 = arith.constant 0 : index
      %12 = vector.load %arg6[%c0_8, %c0_9] : memref<8x256xf32, #tpu.memory_space<vmem>>, vector<8x256xf32>
      %13 = arith.addf %12, %2 : vector<8x256xf32>
      %c0_10 = arith.constant 0 : index
      %c0_11 = arith.constant 0 : index
      %14 = vector.load %arg6[%c0_10, %c0_11] : memref<8x256xf32, #tpu.memory_space<vmem>>, vector<8x256xf32>
      tpu.vector_store %arg6[%c0_10, %c0_11], %13 {strides = array<i32>} : memref<8x256xf32, #tpu.memory_space<vmem>>, vector<8x256xf32>,
    } else {
    }
    %c0_i32_6 = arith.constant 0 : i32
    %9 = arith.cmpi eq, %arg2, %c0_i32_6 : i32
    %10 = arith.extui %9 : i1 to i32
    %c0_i32_7 = arith.constant 0 : i32
    %11 = arith.cmpi ne, %10, %c0_i32_7 : i32
    scf.if %11 {
      %c0_8 = arith.constant 0 : index
      %c0_9 = arith.constant 0 : index
      %12 = vector.load %arg6[%c0_8, %c0_9] : memref<8x256xf32, #tpu.memory_space<vmem>>, vector<8x256xf32>
      %cst = arith.constant dense<0.000000e+00> : vector<8xf32>
      %13 = vector.multi_reduction <add>, %12, %cst [1] : vector<8x256xf32> to vector<8xf32>
      %14 = vector.shape_cast %13 : vector<8xf32> to vector<8x1xf32>
      %c0_10 = arith.constant 0 : index
      %c0_11 = arith.constant 0 : index
      %c0_12 = arith.constant 0 : index
      %15 = vector.load %arg5[%c0_10, %c0_11, %c0_12] : memref<1x8x1xf32, #tpu.memory_space<vmem>>, vector<1x8x1xf32>
      %16 = vector.shape_cast %15 : vector<1x8x1xf32> to vector<8x1xf32>
      %17 = vector.shape_cast %14 : vector<8x1xf32> to vector<1x8x1xf32>
      tpu.vector_store %arg5[%c0_10, %c0_11, %c0_12], %17 {strides = array<i32>} : memref<1x8x1xf32, #tpu.memory_space<vmem>>, vector<1x8x1xf32>,
    } else {
    }
    return
  }
  func.func @transform_0(%arg0: i32, %arg1: i32, %arg2: i32) -> (i32, i32) {
    %c1_i32 = arith.constant 1 : i32
    %0 = arith.muli %arg1, %c1_i32 : i32
    %1 = arith.addi %0, %arg2 : i32
    %c0_i32 = arith.constant 0 : i32
    return %arg0, %1 : i32, i32
  }
  func.func @transform_1(%arg0: i32, %arg1: i32, %arg2: i32) -> (i32, i32) {
    %c1_i32 = arith.constant 1 : i32
    %0 = arith.muli %arg1, %c1_i32 : i32
    %1 = arith.addi %0, %arg2 : i32
    %c0_i32 = arith.constant 0 : i32
    return %arg0, %1 : i32, i32
  }
  func.func @transform_2(%arg0: i32, %arg1: i32, %arg2: i32) -> (i32, i32, i32) {
    %c0_i32 = arith.constant 0 : i32
    %c0_i32_0 = arith.constant 0 : i32
    return %arg1, %arg0, %c0_i32 : i32, i32, i32
  }
}

</mosaic_0001>

<bundles_post_ra>
// kernel: tpu_custom_call.1
= control target key start
LH: loop header
LB: loop body
LE: loop exit
PB: predicated region body
PF: predicated region fallthrough
CT: control target
= control target key end

     0   :  { %7 = vsyncpa [#allocation4], 0  ;;  %s179_s0 = inlined_call_operand.hbm [shape: f32[8,256], index: 0, kind: input, shape index: {}]   ;;  %s180_s1 = inlined_call_operand.hbm [shape: f32[8,256], index: 1, kind: input, shape index: {}]   ;;  %s181_s2 = inlined_call_operand.vmem [shape: f32[1,8,1], index: 2, kind: output, shape index: {}]  }
   0x1   :  { %8 = vsyncpa [#allocation6], 0  ;;  %s135_s9 = smov [#allocation3]   ;;  %s136_s11 = smov [#allocation5]  }
   0x2   :  { %s19_s10 = sshll.u32 %s135_s9, 4  ;;  %s33_s12 = sshll.u32 %s136_s11, 4  ;;  %s20_s10 = int_to_ptr.vmem [resolvable:$true] %s19_s10  ;;  %s34_s12 = int_to_ptr.vmem [resolvable:$true] %s33_s12 }
   0x3   :  { %s87_s15 = scalar_lea.hbm %s179_s0, 256 }
   0x4   :  { %p88_p0 = scmp.ne.s32.totalorder %s179_s0, %s87_s15  ;;  %p91_p1 = scmp.lt.u32.totalorder %s87_s15, %s179_s0 }
   0x6   :  { %p93_p2 = pnand %p91_p1, %p88_p0 }
   0x8   :  { %96 = shalt.err (!%p93_p2)
}
   0x9   :  { %s97_s20 = scalar_lea.vmem %s20_s10, 256  ;;  %p102_p4 = scmp.lt.s32.totalorder %s20_s10, %s20_s10 }
   0xa   :  { %p98_p3 = scmp.ne.s32.totalorder %s20_s10, %s97_s20  ;;  %p103_p5 = scmp.lt.s32.totalorder %s97_s20, %s97_s20 }
   0xc   :  { %p104_p6 = por %p103_p5, %p102_p4 }
   0xe   :  { %p105_p7 = pnand %p104_p6, %p98_p3 }
  0x10   :  { %108 = shalt.err (!%p105_p7)
}
  0x11   :  { %22 = dma.hbm_to_vmem [thread:$0]  %s179_s0, 256, %s20_s10, [#allocation4]  }
  0x12   :  { %s109_s25 = scalar_lea.hbm %s180_s1, 256 }
  0x13   :  { %p110_p8 = scmp.ne.s32.totalorder %s180_s1, %s109_s25  ;;  %p113_p9 = scmp.lt.u32.totalorder %s109_s25, %s180_s1 }
  0x15   :  { %p115_p10 = pnand %p113_p9, %p110_p8 }
  0x17   :  { %118 = shalt.err (!%p115_p10)
}
  0x18   :  { %s119_s30 = scalar_lea.vmem %s34_s12, 256  ;;  %p124_p12 = scmp.lt.s32.totalorder %s34_s12, %s34_s12 }
  0x19   :  { %p120_p11 = scmp.ne.s32.totalorder %s34_s12, %s119_s30  ;;  %p125_p13 = scmp.lt.s32.totalorder %s119_s30, %s119_s30 }
  0x1b   :  { %p126_p0 = por %p125_p13, %p124_p12 }
  0x1d   :  { %p127_p1 = pnand %p126_p0, %p120_p11 }
  0x1f   :  { %130 = shalt.err (!%p127_p1)
}
  0x20   :  { %36 = dma.hbm_to_vmem [thread:$0]  %s180_s1, 256, %s34_s12, [#allocation6]  }
  0x21   :  { %131 = dma.done.wait [#allocation4], 256  }
  0x22   :  { %132 = vsyncadd [#allocation4], 4294967040 }
  0x23   :  { %133 = dma.done.wait [#allocation6], 256  }
  0x24   :  { %134 = vsyncadd [#allocation6], 4294967040  ;;  %v47_v0 = vld [vmem:[#allocation3] sm:$0xff]  ;;  %v48_v1 = vld [vmem:[#allocation3 + $0x8] sm:$0xff]  ;;  %vm77_vm0 = vcmask 7168  }
  0x25   :  { %v49_v2 = vld [vmem:[#allocation5] sm:$0xff]  ;;  %v50_v3 = vld [vmem:[#allocation5 + $0x8] sm:$0xff] }
  0x26   :  { %v51_v4 = vadd.f32 %v49_v2, %v47_v0  ;;  %v52_v5 = vadd.f32 %v50_v3, %v48_v1 }
  0x28   :  { %v74_v6 = vadd.f32 %v52_v5, %v51_v4 }
  0x2a   :  { %75 = vadd.xlane.f32.xlu0 %v74_v6 }
  0xb7   :  { %v76_v7 = vpop.xlane.xlu0 %75 }
  0xb8   :  { %78 = vst.msk [vmem:[%s181_s2] sm:$0xff] %vm77_vm0, %v76_v7 }
  0xb9   :  { %83 = vsyncpa [#allocation4], 1 }
  0xba   :  { %84 = vsyncpa [#allocation6], 1 }

</bundles_post_ra>
